<compile_context>
chip_gen: v7x
topology: tpu7x:2x2x1
jax: 0.10.0
libtpu: 0.0.40
codegen_flags: <defaults>
</compile_context>

<pallas_src>
import functools

import jax
import jax.numpy as jnp
from jax.experimental import pallas as pl
from jax.experimental.pallas import tpu as pltpu


# ---------------------------------------------------------------------------
# Hardware query / constants
# ---------------------------------------------------------------------------
def _vmem_capacity_bytes():
    try:
        return int(pltpu.get_tpu_info().vmem_capacity_bytes)
    except Exception:
        return 64 * 1024 * 1024  # conservative: v7x per-TC VMEM


_VMEM_CAPACITY = _vmem_capacity_bytes()

_TM_MAX = 512          # max rows per M block (power of two, bucketed)
_TN_MAX = 512          # max output-lane block for modest N
_TN_MAX_LARGE = 1024   # wider block for large N (less x re-streaming)
_TK_MAX = 2048         # K-tile cap (was 512)


# ---------------------------------------------------------------------------
# Kernels
# ---------------------------------------------------------------------------
def _linear_bias_kernel(x_ref, w_ref, b_ref, o_ref, acc_ref):
    # x_ref: (tm, tk)  w_ref: (tk, tn)  b_ref: (1, tn)  o_ref: (tm, tn)
    k = pl.program_id(2)

    @pl.when(k == 0)
    def _init():
        acc_ref[...] = jnp.zeros_like(acc_ref)

    acc_ref[...] += jnp.dot(x_ref[...], w_ref[...],
                            preferred_element_type=jnp.float32)

    @pl.when(k == pl.num_programs(2) - 1)
    def _finalize():
        o_ref[...] = (acc_ref[...]
                      + b_ref[...].astype(jnp.float32)).astype(o_ref.dtype)


def _linear_nobias_kernel(x_ref, w_ref, o_ref, acc_ref):
    k = pl.program_id(2)

    @pl.when(k == 0)
    def _init():
        acc_ref[...] = jnp.zeros_like(acc_ref)

    acc_ref[...] += jnp.dot(x_ref[...], w_ref[...],
                            preferred_element_type=jnp.float32)

    @pl.when(k == pl.num_programs(2) - 1)
    def _finalize():
        o_ref[...] = acc_ref[...].astype(o_ref.dtype)


# Single-K-tile specializations: no scratch, no init/accumulate pass.
def _linear_bias_single_kernel(x_ref, w_ref, b_ref, o_ref):
    acc = jnp.dot(x_ref[...], w_ref[...], preferred_element_type=jnp.float32)
    o_ref[...] = (acc + b_ref[...].astype(jnp.float32)).astype(o_ref.dtype)


def _linear_nobias_single_kernel(x_ref, w_ref, o_ref):
    o_ref[...] = jnp.dot(x_ref[...], w_ref[...],
                         preferred_element_type=jnp.float32).astype(o_ref.dtype)


# ---------------------------------------------------------------------------
# Helpers
# ---------------------------------------------------------------------------
def _round_up(x, m):
    return ((x + m - 1) // m) * m


def _pick_tm(m, itemsize, tm_max):
    # Sublane packing: bf16 packs 2 rows/sublane, int8/fp8 pack 4.
    min_tm = {1: 32, 2: 16}.get(itemsize, 8)
    tm = min_tm
    while tm < m and tm < tm_max:
        tm *= 2
    return min(tm, tm_max)


def _block_spec(shape, index_map, buffers=2):
    """BlockSpec with optional >2-deep pipelining (graceful fallback)."""
    if buffers > 2 and hasattr(pl, "Buffered"):
        try:
            return pl.BlockSpec(shape, index_map,
                                pipeline_mode=pl.Buffered(buffers))
        except TypeError:
            pass
    return pl.BlockSpec(shape, index_map)


def _footprint_bytes(tm, tn, tk, x_bytes, w_bytes, w_buffers=3):
    """Worst-case VMEM footprint of one pipelined step (f32 acc + out)."""
    return (2 * tm * tk * x_bytes            # double-buffered x
            + w_buffers * tk * tn * w_bytes  # (up to) triple-buffered weight
            + 2 * tm * tn * 4                # double-buffered output (f32 worst)
            + tm * tn * 4                    # f32 accumulator
            + 2 * 8 * tn * w_bytes)          # bias (sublane-padded)


# ---------------------------------------------------------------------------
# pallas_call wrapper
# ---------------------------------------------------------------------------
@functools.partial(jax.jit,
                   static_argnames=("tm", "tn", "tk", "out_dtype", "w_buffers"))
def _linear_pallas(x2d, w_kn, b2d, *, tm, tn, tk, out_dtype, w_buffers):
    """x2d: (M, K) padded; w_kn: (K, N) padded; b2d: (1, N) padded or None."""
    M, K = x2d.shape
    Kw, N = w_kn.shape
    assert K == Kw and M % tm == 0 and N % tn == 0 and K % tk == 0

    x_bytes = x2d.dtype.itemsize
    w_bytes = w_kn.dtype.itemsize
    out_bytes = jnp.dtype(out_dtype).itemsize
    has_bias = b2d is not None
    single_k = (K == tk)

    n_blk, m_blk, k_blk = N // tn, M // tm, K // tk

    cost = pl.CostEstimate(
        flops=2 * M * N * K,
        transcendentals=0,
        bytes_accessed=int(n_blk * M * K * x_bytes        # x re-streamed per N block
                           + m_blk * K * N * w_bytes      # W re-streamed per M block
                           + M * N * out_bytes),
    )

    # vmem_limit = ~1.5x actual need, floor 8 MiB, generation-aware cap.
    need = (2 * tm * tk * x_bytes
            + w_buffers * tk * tn * w_bytes
            + 2 * tm * tn * out_bytes
            + (0 if single_k else tm * tn * 4)
            + (2 * 8 * tn * w_bytes if has_bias else 0))
    vmem_limit = int(min(max(int(1.5 * need), 8 * 1024 * 1024),
                         (_VMEM_CAPACITY * 3) // 4))

    if single_k:
        grid = (n_blk, m_blk)
        x_spec = pl.BlockSpec((tm, tk), lambda j, i: (i, 0))
        w_spec = _block_spec((tk, tn), lambda j, i: (0, j), w_buffers)
        b_spec = pl.BlockSpec((1, tn), lambda j, i: (0, j))
        o_spec = pl.BlockSpec((tm, tn), lambda j, i: (i, j))
        scratch = []
        sem = ("parallel", "parallel")
        kernel = (_linear_bias_single_kernel if has_bias
                  else _linear_nobias_single_kernel)
    else:
        # Grid: j (N) outer, i (M) middle, k (reduction) innermost/"arbitrary".
        grid = (n_blk, m_blk, k_blk)
        x_spec = pl.BlockSpec((tm, tk), lambda j, i, kk: (i, kk))
        w_spec = _block_spec((tk, tn), lambda j, i, kk: (kk, j), w_buffers)
        b_spec = pl.BlockSpec((1, tn), lambda j, i, kk: (0, j))
        o_spec = pl.BlockSpec((tm, tn), lambda j, i, kk: (i, j))
        scratch = [pltpu.VMEM((tm, tn), jnp.float32)]
        sem = ("parallel", "parallel", "arbitrary")
        kernel = _linear_bias_kernel if has_bias else _linear_nobias_kernel

    in_specs = [x_spec, w_spec] + ([b_spec] if has_bias else [])
    args = (x2d, w_kn) + ((b2d,) if has_bias else ())

    return pl.pallas_call(
        kernel,
        out_shape=jax.ShapeDtypeStruct((M, N), out_dtype),
        grid_spec=pltpu.PrefetchScalarGridSpec(
            num_scalar_prefetch=0,
            grid=grid,
            in_specs=in_specs,
            out_specs=o_spec,
            scratch_shapes=scratch),
        compiler_params=pltpu.CompilerParams(
            dimension_semantics=sem,
            vmem_limit_bytes=vmem_limit),
        cost_estimate=cost,
    )(*args)


# ---------------------------------------------------------------------------
# Module-like wrapper (mirrors the PyTorch FastLinear forward semantics)
# ---------------------------------------------------------------------------
class FastLinear:
    """Pallas analog of PyTorch FastLinear: forward(x) = x @ weight.T + bias.

    weight: (N, K) PyTorch convention; bias: (N,) or None.
    Weight is transposed and padded to tile-aligned (K_pad, N_pad) ONCE here,
    so the per-call path pays no HBM transpose. Optional `compute_dtype`
    (e.g. jnp.bfloat16) casts operands for the MXU while accumulating in f32
    (output keeps x.dtype) -- an intentional precision tradeoff vs f32 F.linear.
    """

    def __init__(self, weight, bias=None, *, compute_dtype=None,
                 tn_max=None, tk_max=None):
        weight = jnp.asarray(weight)
        n, k = weight.shape
        self.out_features = n
        self.in_features = k
        self.compute_dtype = compute_dtype

        w_bytes = (jnp.dtype(compute_dtype).itemsize if compute_dtype is not None
                   else weight.dtype.itemsize)
        # x dtype unknown at load time when compute_dtype is None -> assume f32.
        x_bytes_est = w_bytes if compute_dtype is not None else 4

        n128 = _round_up(n, 128)
        k128 = _round_up(k, 128)

        if tn_max is None:
            tn_max = _TN_MAX_LARGE if n128 >= 2048 else _TN_MAX
        if tk_max is None:
            tk_max = _TK_MAX

        tk = min(tk_max, k128)
        if n128 >= 256:
            # >= 2 N-blocks so both v7x TensorCores get work even when the
            # decode path has a single M block.
            tn = min(tn_max, _round_up((n128 + 1) // 2, 128))
        else:
            tn = n128

        # Shrink tiles only if the worst-case footprint (tm = _TM_MAX, 3-deep
        # weight buffering) doesn't fit ~half the per-core VMEM of this chip
        # generation (32 MiB on v7x, 64 MiB on v5e/v6e).
        budget = _VMEM_CAPACITY // 2
        while _footprint_bytes(_TM_MAX, tn, tk, x_bytes_est, w_bytes) > budget \
                and tk > 512:
            tk = max(512, _round_up(tk // 2, 128))
        while _footprint_bytes(_TM_MAX, tn, tk, x_bytes_est, w_bytes) > budget \
                and tn > 256:
            tn = max(256, _round_up(tn // 2, 128))
        tm_max = _TM_MAX
        while _footprint_bytes(tm_max, tn, tk, x_bytes_est, w_bytes) > budget \
                and tm_max > 64:
            tm_max //= 2

        self.tn, self.tk, self.tm_max = tn, tk, tm_max
        self.n_pad = _round_up(n, tn)
        self.k_pad = _round_up(k, tk)

        w_kn = weight.T  # (K, N) -- done once at load time, not per forward call.
        if compute_dtype is not None:
            w_kn = w_kn.astype(compute_dtype)
        if (self.k_pad, self.n_pad) != (k, n):
            w_kn = jnp.pad(w_kn, ((0, self.k_pad - k), (0, self.n_pad - n)))
        self.w_kn = w_kn

        if bias is not None:
            bias = jnp.asarray(bias)
            self.b2d = jnp.pad(bias, (0, self.n_pad - n)).reshape(1, self.n_pad)
        else:
            self.b2d = None

    def __call__(self, x):
        *lead, k = x.shape
        assert k == self.in_features, (k, self.in_features)
        out_dtype = jnp.dtype(x.dtype)

        x2d = x.reshape(-1, k)
        m = x2d.shape[0]
        if m == 0:  # empty batch: zero-extent grid guard
            return jnp.zeros((*lead, self.out_features), dtype=out_dtype)

        if self.compute_dtype is not None and x2d.dtype != jnp.dtype(self.compute_dtype):
            x2d = x2d.astype(self.compute_dtype)

        tm = _pick_tm(m, x2d.dtype.itemsize, self.tm_max)
        m_pad = _round_up(m, tm)

        pad_m, pad_k = m_pad - m, self.k_pad - k
        if pad_m or pad_k:
            # Pad only when needed (K zero-padding for correctness; M padding
            # only for grid divisibility -- padded rows are sliced off below).
            x2d = jnp.pad(x2d, ((0, pad_m), (0, pad_k)))

        m_blocks = m_pad // tm
        n_blocks = self.n_pad // self.tn
        k_blocks = self.k_pad // self.tk
        # Decode-like call (single M block) is pure weight streaming: deepen
        # the weight input pipeline to hide DMA latency jitter.
        w_buffers = 3 if (m_blocks == 1 and n_blocks * k_blocks >= 3) else 2

        out = _linear_pallas(x2d, self.w_kn, self.b2d,
                             tm=tm, tn=self.tn, tk=self.tk,
                             out_dtype=out_dtype, w_buffers=w_buffers)
        out = out[:m, :self.out_features]
        return out.reshape(*lead, self.out_features)

    forward = __call__


def fast_linear(x, weight, bias=None):
    """One-shot convenience (re-does weight prep; prefer FastLinear for reuse)."""
    return FastLinear(weight, bias)(x)


# TODO(synk): FastLinear.load / load_multi read checkpoints via a `Weights`
# object (pure I/O, no compute) -- out of scope for a Pallas kernel.

if __name__ == "__main__":
    key = jax.random.PRNGKey(0)
    k_x, k_w, k_b, k_x2, k_w2, k_b2 = jax.random.split(key, 6)

    # --- Test 1: small shapes -> single-K-tile fast path, with & without bias.
    batch, seq, hidden, out_features = 2, 8, 32, 64
    x = jax.random.normal(k_x, (batch, seq, hidden), dtype=jnp.float32)
    weight = jax.random.normal(k_w, (out_features, hidden), dtype=jnp.float32) * 0.05
    bias = jax.random.normal(k_b, (out_features,), dtype=jnp.float32) * 0.1

    layer = FastLinear(weight, bias)
    y = jax.block_until_ready(layer(x))
    y_ref = jnp.einsum("bsk,nk->bsn", x, weight) + bias
    assert y.shape == (batch, seq, out_features), y.shape
    assert jnp.allclose(y, y_ref, atol=1e-4, rtol=1e-4), float(
        jnp.max(jnp.abs(y - y_ref)))

    layer_nb = FastLinear(weight, None)
    y_nb = jax.block_until_ready(layer_nb(x))
    y_nb_ref = jnp.einsum("bsk,nk->bsn", x, weight)
    assert jnp.allclose(y_nb, y_nb_ref, atol=1e-4, rtol=1e-4), float(
        jnp.max(jnp.abs(y_nb - y_nb_ref)))

    # Empty-batch guard (m == 0).
    x_empty = jnp.zeros((0, seq, hidden), dtype=jnp.float32)
    assert layer(x_empty).shape == (0, seq, out_features)

    # --- Test 2: multi-K-tile accumulation path + deep-buffered decode weight
    # streaming (tile caps lowered so small shapes exercise the 3-D grid).
    hidden2, out2, m2 = 512, 512, 4
    x2 = jax.random.normal(k_x2, (m2, hidden2), dtype=jnp.float32)
    weight2 = jax.random.normal(k_w2, (out2, hidden2), dtype=jnp.float32) * 0.02
    bias2 = jax.random.normal(k_b2, (out2,), dtype=jnp.float32) * 0.1
    layer2 = FastLinear(weight2, bias2, tk_max=256, tn_max=256)
    y2 = jax.block_until_ready(layer2(x2))
    y2_ref = x2 @ weight2.T + bias2
    assert y2.shape == (m2, out2), y2.shape
    assert jnp.allclose(y2, y2_ref, atol=1e-3, rtol=1e-3), float(
        jnp.max(jnp.abs(y2 - y2_ref)))

    print("KERNEL_OK")
</pallas_src>

<mosaic_0001>
module attributes {stable_mosaic.version = 11 : i64} {
  func.func @_linear_bias_single_kernel(%arg0: i32, %arg1: i32, %arg2: memref<16x128xf32, #tpu.memory_space<vmem>>, %arg3: memref<128x128xf32, #tpu.memory_space<vmem>>, %arg4: memref<1x128xf32, #tpu.memory_space<vmem>>, %arg5: memref<16x128xf32, #tpu.memory_space<vmem>>) attributes {dimension_semantics = [#tpu.dimension_semantics<parallel>, #tpu.dimension_semantics<parallel>], iteration_bounds = array<i64: 1, 1>, scalar_prefetch = 0 : i64, scratch_operands = 0 : i64, tpu.core_type = #tpu.core_type<tc>, window_params = [{transform_indices = @transform_0, window_bounds = array<i64: 16, 128>}, {transform_indices = @transform_1, window_bounds = array<i64: 128, 128>}, {transform_indices = @transform_2, window_bounds = array<i64: 1, 128>}, {transform_indices = @transform_3, window_bounds = array<i64: 16, 128>}]} {
    %c0 = arith.constant 0 : index
    %c0_0 = arith.constant 0 : index
    %0 = vector.load %arg2[%c0, %c0_0] : memref<16x128xf32, #tpu.memory_space<vmem>>, vector<16x128xf32>
    %c0_1 = arith.constant 0 : index
    %c0_2 = arith.constant 0 : index
    %1 = vector.load %arg3[%c0_1, %c0_2] : memref<128x128xf32, #tpu.memory_space<vmem>>, vector<128x128xf32>
    %cst = arith.constant dense<0.000000e+00> : vector<16x128xf32>
    %2 = tpu.matmul %0, %1, %cst {dimension_numbers = #tpu.dot_dimension_numbers<[1], [0], [0], [1], [0, 0, 1, 1], [], []>} : vector<16x128xf32>, vector<128x128xf32>, vector<16x128xf32> -> vector<16x128xf32>
    %c0_3 = arith.constant 0 : index
    %c0_4 = arith.constant 0 : index
    %3 = vector.load %arg4[%c0_3, %c0_4] : memref<1x128xf32, #tpu.memory_space<vmem>>, vector<1x128xf32>
    %4 = vector.broadcast %3 : vector<1x128xf32> to vector<16x128xf32>
    %5 = arith.addf %2, %4 : vector<16x128xf32>
    %c0_5 = arith.constant 0 : index
    %c0_6 = arith.constant 0 : index
    %6 = vector.load %arg5[%c0_5, %c0_6] : memref<16x128xf32, #tpu.memory_space<vmem>>, vector<16x128xf32>
    tpu.vector_store %arg5[%c0_5, %c0_6], %5 {strides = array<i32>} : memref<16x128xf32, #tpu.memory_space<vmem>>, vector<16x128xf32>,
    return
  }
  func.func @transform_0(%arg0: i32, %arg1: i32) -> (i32, i32) {
    %c0_i32 = arith.constant 0 : i32
    %c0_i32_0 = arith.constant 0 : i32
    return %arg1, %c0_i32 : i32, i32
  }
  func.func @transform_1(%arg0: i32, %arg1: i32) -> (i32, i32) {
    %c0_i32 = arith.constant 0 : i32
    %c0_i32_0 = arith.constant 0 : i32
    return %c0_i32, %arg0 : i32, i32
  }
  func.func @transform_2(%arg0: i32, %arg1: i32) -> (i32, i32) {
    %c0_i32 = arith.constant 0 : i32
    %c0_i32_0 = arith.constant 0 : i32
    return %c0_i32, %arg0 : i32, i32
  }
  func.func @transform_3(%arg0: i32, %arg1: i32) -> (i32, i32) {
    %c0_i32 = arith.constant 0 : i32
    return %arg1, %arg0 : i32, i32
  }
}

</mosaic_0001>

<bundles_post_ra>
// kernel: _linear_pallas.1
= control target key start
LH: loop header
LB: loop body
LE: loop exit
PB: predicated region body
PF: predicated region fallthrough
CT: control target
= control target key end

     0   :  { %8 = vsyncpa [#allocation3], 0  ;;  %s399_s0 = inlined_call_operand.hbm [shape: f32[16,128], index: 0, kind: input, shape index: {}]   ;;  %s400_s1 = inlined_call_operand.hbm [shape: f32[128,128], index: 1, kind: input, shape index: {}]   ;;  %s401_s2 = inlined_call_operand.vmem [shape: f32[1,128], index: 2, kind: input, shape index: {}]   ;;  %s402_s3 = inlined_call_operand.hbm [shape: f32[16,128], index: 3, kind: output, shape index: {}]  }
   0x1   :  { %9 = vsyncpa [#allocation6], 0 }
   0x2   :  { %10 = vsyncpa [#allocation4], 0  ;;  %s326_s12 = smov [#allocation2]   ;;  %s254_s16 = scalar_lea.hbm %s399_s0, 256 }
   0x3   :  { %s16_s13 = sshll.u32 %s326_s12, 4  ;;  %p255_p0 = scmp.ne.s32.totalorder %s399_s0, %s254_s16  ;;  %s17_s13 = int_to_ptr.vmem [resolvable:$true] %s16_s13 }
   0x4   :  { %p258_p1 = scmp.lt.u32.totalorder %s254_s16, %s399_s0 }
   0x6   :  { %p260_p2 = pnand %p258_p1, %p255_p0 }
   0x8   :  { %263 = shalt.err (!%p260_p2)
}
   0x9   :  { %s264_s21 = scalar_lea.vmem %s17_s13, 256  ;;  %p269_p4 = scmp.lt.s32.totalorder %s17_s13, %s17_s13 }
   0xa   :  { %p265_p3 = scmp.ne.s32.totalorder %s17_s13, %s264_s21  ;;  %p270_p5 = scmp.lt.s32.totalorder %s264_s21, %s264_s21 }
   0xc   :  { %p271_p6 = por %p270_p5, %p269_p4 }
   0xe   :  { %p272_p7 = pnand %p271_p6, %p265_p3 }
  0x10   :  { %275 = shalt.err (!%p272_p7)
}
  0x11   :  { %s327_s22 = smov 128   ;;  %s328_s23 = smov 8  }
  0x12   :  { %22 = dma.hbm_to_vmem [thread:$0]  %s399_s0, 256, %s17_s13, [#allocation3], %s327_s22, %s327_s22, %s328_s23  }
  0x13   :  { %s329_s26 = smov [#allocation5]   ;;  %s276_s30 = scalar_lea.hbm %s400_s1, 2048 }
  0x14   :  { %s28_s27 = sshll.u32 %s329_s26, 4  ;;  %p277_p8 = scmp.ne.s32.totalorder %s400_s1, %s276_s30  ;;  %s29_s27 = int_to_ptr.vmem [resolvable:$true] %s28_s27 }
  0x15   :  { %p280_p9 = scmp.lt.u32.totalorder %s276_s30, %s400_s1 }
  0x17   :  { %p282_p10 = pnand %p280_p9, %p277_p8 }
  0x19   :  { %285 = shalt.err (!%p282_p10)
}
  0x1a   :  { %s286_s8 = scalar_lea.vmem %s29_s27, 2048  ;;  %p291_p12 = scmp.lt.s32.totalorder %s29_s27, %s29_s27 }
  0x1b   :  { %p287_p11 = scmp.ne.s32.totalorder %s29_s27, %s286_s8  ;;  %p292_p13 = scmp.lt.s32.totalorder %s286_s8, %s286_s8 }
  0x1d   :  { %p293_p0 = por %p292_p13, %p291_p12 }
  0x1f   :  { %p294_p1 = pnand %p293_p0, %p287_p11 }
  0x21   :  { %297 = shalt.err (!%p294_p1)
}
  0x22   :  { %34 = dma.hbm_to_vmem [thread:$0]  %s400_s1, 2048, %s29_s27, [#allocation6], %s327_s22, %s327_s22, %s328_s23  }
  0x23   :  { %320 = dma.done.wait [#allocation3], 256  }
  0x24   :  { %321 = vsyncadd [#allocation3], 4294967040 }
  0x25   :  { %322 = dma.done.wait [#allocation6], 2048  }
  0x26   :  { %323 = vsyncadd [#allocation6], 4294965248  ;;  %v45_v0 = vld [vmem:[#allocation5] sm:$0xff]  ;;  %v46_v1 = vld [vmem:[#allocation5 + $0x8] sm:$0xff]  ;;  %s330_s11 = smov [#allocation7]  }
  0x27   :  { %v47_v2 = vld [vmem:[#allocation5 + $0x10] sm:$0xff]  ;;  %v217_v3 = vpack.c.bf16 %v46_v1, %v45_v0  ;;  %v48_v4 = vld [vmem:[#allocation5 + $0x18] sm:$0xff]  ;;  %v49_v6 = vld [vmem:[#allocation5 + $0x20] sm:$0xff]  ;;  %s150_s12 = sshll.u32 %s330_s11, 4  ;;  %s151_s12 = int_to_ptr.vmem [resolvable:$true] %s150_s12 }
  0x28   :  { %v221_v5 = vpack.c.bf16 %v48_v4, %v47_v2  ;;  %v50_v7 = vld [vmem:[#allocation5 + $0x28] sm:$0xff]  ;;  %v43_v9 = vld [vmem:[#allocation2] sm:$0xff]  ;;  %v52_v11 = vld [vmem:[#allocation5 + $0x38] sm:$0xff]  ;;  %s298_s13 = scalar_lea.vmem %s151_s12, 256  ;;  %p303_p3 = scmp.lt.s32.totalorder %s151_s12, %s151_s12 }
  0x29   :  { %218 = vmatprep.subr.bf16.mxu0 %v217_v3  ;;  %v225_v8 = vpack.c.bf16 %v50_v7, %v49_v6  ;;  %v51_v10 = vld [vmem:[#allocation5 + $0x30] sm:$0xff]  ;;  %214 = vmatprep.mubr.f32.mxu0 %v43_v9  ;;  %v53_v13 = vld [vmem:[#allocation5 + $0x40] sm:$0xff]  ;;  %v54_v14 = vld [vmem:[#allocation5 + $0x48] sm:$0xff]  ;;  %p299_p2 = scmp.ne.s32.totalorder %s151_s12, %s298_s13  ;;  %p304_p4 = scmp.lt.s32.totalorder %s298_s13, %s298_s13 }
  0x2a   :  { %220 = vmatpush3.bf16.msra.mxu0 %v217_v3  ;;  %v229_v12 = vpack.c.bf16 %v52_v11, %v51_v10  ;;  %v233_v15 = vpack.c.bf16 %v54_v14, %v53_v13  ;;  %v55_v16 = vld [vmem:[#allocation5 + $0x50] sm:$0xff]  ;;  %v56_v17 = vld [vmem:[#allocation5 + $0x58] sm:$0xff]  ;;  %v57_v19 = vld [vmem:[#allocation5 + $0x60] sm:$0xff] }
  0x2b   :  { %222 = vmatprep.subr.bf16.mxu0 %v221_v5  ;;  %v237_v18 = vpack.c.bf16 %v56_v17, %v55_v16  ;;  %v58_v20 = vld [vmem:[#allocation5 + $0x68] sm:$0xff]  ;;  %v59_v22 = vld [vmem:[#allocation5 + $0x70] sm:$0xff]  ;;  %v60_v23 = vld [vmem:[#allocation5 + $0x78] sm:$0xff]  ;;  %p305_p5 = por %p304_p4, %p303_p3 }
  0x2c   :  { %v241_v21 = vpack.c.bf16 %v58_v20, %v57_v19  ;;  %v245_v24 = vpack.c.bf16 %v60_v23, %v59_v22  ;;  %v44_v25 = vld [vmem:[#allocation2 + $0x8] sm:$0xff]  ;;  %v163_v26 = vld [vmem:[%s401_s2] ss:$0 sm:$0xff] }
  0x2d   :  { %p306_p6 = pnand %p305_p5, %p299_p2 }
  0x2e   :  { %224 = vmatpush3.bf16.msra.mxu0 %v221_v5 }
  0x2f   :  { %226 = vmatprep.subr.bf16.mxu0 %v225_v8 }
  0x32   :  { %228 = vmatpush3.bf16.msra.mxu0 %v225_v8 }
  0x33   :  { %230 = vmatprep.subr.bf16.mxu0 %v229_v12 }
  0x36   :  { %232 = vmatpush3.bf16.msra.mxu0 %v229_v12 }
  0x37   :  { %234 = vmatprep.subr.bf16.mxu0 %v233_v15 }
  0x3a   :  { %236 = vmatpush3.bf16.msra.mxu0 %v233_v15 }
  0x3b   :  { %238 = vmatprep.subr.bf16.mxu0 %v237_v18 }
  0x3e   :  { %240 = vmatpush3.bf16.msra.mxu0 %v237_v18 }
  0x3f   :  { %242 = vmatprep.subr.bf16.mxu0 %v241_v21 }
  0x42   :  { %244 = vmatpush3.bf16.msra.mxu0 %v241_v21 }
  0x43   :  { %246 = vmatprep.subr.bf16.mxu0 %v245_v24 }
  0x46   :  { %248 = vmatpush3.bf16.msra.mxu0 %v245_v24 }
  0x49   :  { %215 = vmatmul.mubr.f32.vlgmr.msra.gmra.mrb[0].mxu0 %v44_v25 }
 0x11c   :  { %v216_v27 = vpop.f32.mrb[0].mxu0 }
 0x11d   :  { %v140_v28 = vadd.f32 %v216_v27, %v163_v26  ;;  %v134_v29 = vpop.f32.mrb[1].mxu0 }
 0x11e   :  { %v135_v30 = vadd.f32 %v163_v26, %v134_v29 }
 0x11f   :  { %144 = vst [vmem:[#allocation7 + $0x8] sm:$0xff] %v140_v28 }
 0x120   :  { %143 = vst [vmem:[#allocation7] sm:$0xff] %v135_v30 }
 0x121   :  { %309 = shalt.err (!%p306_p6)
}
 0x122   :  { %s310_s2 = scalar_lea.hbm %s402_s3, 256 }
 0x123   :  { %p311_p7 = scmp.ne.s32.totalorder %s402_s3, %s310_s2  ;;  %p314_p8 = scmp.lt.u32.totalorder %s310_s2, %s402_s3 }
 0x125   :  { %p316_p9 = pnand %p314_p8, %p311_p7 }
 0x127   :  { %319 = shalt.err (!%p316_p9)
}
 0x128   :  { %156 = dma.vmem_to_hbm [thread:$0]  %s151_s12, 256, %s402_s3, [#allocation4], %s327_s22, %s327_s22, %s328_s23  }
 0x129   :  { %324 = dma.done.wait [#allocation4], 256  }
 0x12a   :  { %325 = vsyncadd [#allocation4], 4294967040 }
 0x12b   :  { %160 = vsyncpa [#allocation3], 1 }
 0x12c   :  { %161 = vsyncpa [#allocation6], 1 }
 0x12d   :  { %162 = vsyncpa [#allocation4], 1 }

</bundles_post_ra>
